<compile_context>
chip_gen: v7x
topology: tpu7x:2x2x1
jax: 0.10.0
libtpu: 0.0.40
codegen_flags: <defaults>
</compile_context>

<pallas_src>
import functools

import jax
import jax.numpy as jnp
from jax.experimental import pallas as pl
from jax.experimental.pallas import tpu as pltpu


def _round_up(x: int, m: int) -> int:
    return ((x + m - 1) // m) * m


def _row_base(dtype) -> int:
    """Native sublane multiple for this dtype (8 f32, 16 bf16, 32 int8)."""
    itemsize = jnp.dtype(dtype).itemsize
    if itemsize >= 4:
        return 8
    if itemsize == 2:
        return 16
    return 32


def _choose_tile(total: int, base: int, target: int) -> int:
    """Full extent if it fits under target (allowed even when unaligned),
    otherwise a base-aligned tile; the remainder becomes a masked tail block."""
    if total <= target:
        return total
    return max(base, (target // base) * base)


def _ensure_min_blocks(rows, cols, t_r, t_c, row_base, min_blocks=4):
    """Shrink tiles (rows first, keeping lane-dense columns) so the grid has
    enough steps to shard across v7x's two TensorCores and to pipeline."""
    def nblocks(tr, tc):
        return pl.cdiv(rows, tr) * pl.cdiv(cols, tc)

    while nblocks(t_r, t_c) < min_blocks and t_r > row_base:
        t_r = max(row_base, _round_up(t_r // 2, row_base))
    while nblocks(t_r, t_c) < min_blocks and t_c > 128:
        t_c = max(128, _round_up(t_c // 2, 128))
    return t_r, t_c


def _frozen_bn_kernel(x_ref, scale_ref, bias_ref, o_ref, *, t_r, sliced):
    # x_ref: (t_r, t_c) tile.  scale_ref / bias_ref: full resident (R_pad, 1)
    # f32 fused parameters; slice out this row tile's rows.
    if sliced:
        start = pl.multiple_of(pl.program_id(0) * t_r, t_r)
        s = scale_ref[pl.ds(start, t_r), :]
        b = bias_ref[pl.ds(start, t_r), :]
    else:
        s = scale_ref[...]
        b = bias_ref[...]
    x = x_ref[...].astype(jnp.float32)
    o_ref[...] = (x * s + b).astype(o_ref.dtype)


def frozen_batch_norm_2d(x, weight, bias, running_mean, running_var, eps=1e-5,
                         row_tile_target=None, col_tile_target=None,
                         out_dtype=None):
    """x: (N, C, H, W).  Matches PyTorch FrozenBatchNorm2d.forward."""
    N, C, H, W = x.shape
    rows, HW = N * C, H * W

    # PyTorch promotion: f32 buffers * bf16 input -> f32 output.
    if out_dtype is None:
        out_dtype = jnp.result_type(x.dtype, jnp.float32)

    # Generation-aware defaults.
    try:
        kind = jax.devices()[0].device_kind.lower()
    except Exception:  # pragma: no cover - defensive
        kind = ""
    is_v7x = "v7" in kind
    if row_tile_target is None:
        row_tile_target = 256 if is_v7x else 512   # ~4 MiB f32 vs ~8 MiB blocks
    if col_tile_target is None:
        col_tile_target = 4096

    # Fused affine constants in f32 (matches param-dtype math of the module):
    #   scale = w * rsqrt(rv + eps),  bias = b - rm * scale.
    scale = weight.astype(jnp.float32) * jax.lax.rsqrt(
        running_var.astype(jnp.float32) + eps)                       # (C,)
    fbias = bias.astype(jnp.float32) - running_mean.astype(jnp.float32) * scale

    # Lane-dense 2-D view: rows = N*C, cols = H*W (free reshape for NCHW).
    x2 = x.reshape(rows, HW)

    row_base = _row_base(x.dtype)
    t_r = _choose_tile(rows, row_base, row_tile_target)
    t_c = _choose_tile(HW, 128, col_tile_target)
    t_r, t_c = _ensure_min_blocks(rows, HW, t_r, t_c, row_base, min_blocks=4)
    grid = (pl.cdiv(rows, t_r), pl.cdiv(HW, t_c))

    # Resident fused params; pad only these tiny (rows,) vectors so the
    # in-kernel row slice is always in-bounds (no big-tensor padding).
    r_pad = grid[0] * t_r
    scale_full = jnp.tile(scale, N)
    bias_full = jnp.tile(fbias, N)
    if r_pad != rows:
        scale_full = jnp.pad(scale_full, (0, r_pad - rows))
        bias_full = jnp.pad(bias_full, (0, r_pad - rows))
    scale_r = scale_full.reshape(r_pad, 1)
    bias_r = bias_full.reshape(r_pad, 1)
    param_spec = pl.BlockSpec((r_pad, 1), lambda r, c: (0, 0))  # fetched once

    # VMEM budget from the actual footprint (double-buffered in + out blocks
    # plus params and headroom), capped per generation.
    blk = t_r * t_c
    footprint = 2 * blk * (jnp.dtype(x.dtype).itemsize
                           + jnp.dtype(out_dtype).itemsize)
    footprint += 2 * 2 * r_pad * 4 + (8 << 20)
    vmem_cap = (48 << 20) if is_v7x else (100 << 20)
    vmem_limit = int(min(vmem_cap, max(32 << 20, footprint)))

    kernel = functools.partial(_frozen_bn_kernel, t_r=t_r, sliced=grid[0] > 1)

    out = pl.pallas_call(
        kernel,
        out_shape=jax.ShapeDtypeStruct((rows, HW), out_dtype),
        grid_spec=pltpu.PrefetchScalarGridSpec(
            num_scalar_prefetch=0,
            grid=grid,
            in_specs=[
                pl.BlockSpec((t_r, t_c), lambda r, c: (r, c)),
                param_spec,
                param_spec,
            ],
            out_specs=pl.BlockSpec((t_r, t_c), lambda r, c: (r, c)),
        ),
        compiler_params=pltpu.CompilerParams(
            dimension_semantics=("parallel", "parallel"),
            vmem_limit_bytes=vmem_limit,
        ),
    )(x2, scale_r, bias_r)

    return out.reshape(N, C, H, W)


def _reference(x, weight, bias, running_mean, running_var, eps=1e-5):
    C = x.shape[1]
    scale = (weight * jax.lax.rsqrt(running_var + eps)).reshape(1, C, 1, 1)
    bias_r = (bias - running_mean *
              (weight * jax.lax.rsqrt(running_var + eps))).reshape(1, C, 1, 1)
    return x * scale + bias_r


if __name__ == "__main__":
    key = jax.random.PRNGKey(0)

    def make_inputs(key, N, C, H, W):
        kx, kw, kb, km, kv = jax.random.split(key, 5)
        x = jax.random.normal(kx, (N, C, H, W), dtype=jnp.float32)
        weight = jnp.ones((C,), jnp.float32) + 0.1 * jax.random.normal(kw, (C,))
        bias = jnp.zeros((C,), jnp.float32) + 0.1 * jax.random.normal(kb, (C,))
        running_mean = 0.1 * jax.random.normal(km, (C,))
        running_var = jnp.ones((C,), jnp.float32) + 0.05 * jax.random.uniform(kv, (C,))
        return x, weight, bias, running_mean, running_var

    k1, k2, k3 = jax.random.split(key, 3)

    # Primary check: small aligned shape.
    x, w, b, rm, rv = make_inputs(k1, 2, 4, 16, 16)
    out = jax.block_until_ready(frozen_batch_norm_2d(x, w, b, rm, rv))
    ref = _reference(x, w, b, rm, rv)
    assert jnp.allclose(out, ref, atol=1e-5, rtol=1e-5), "mismatch (aligned)"

    # Awkward CNN-like shape: C=3, HW=49 -> full-extent unaligned blocks, no pad.
    x2, w2, b2, rm2, rv2 = make_inputs(k2, 2, 3, 7, 7)
    out2 = jax.block_until_ready(frozen_batch_norm_2d(x2, w2, b2, rm2, rv2))
    ref2 = _reference(x2, w2, b2, rm2, rv2)
    assert jnp.allclose(out2, ref2, atol=1e-5, rtol=1e-5), "mismatch (unaligned)"

    # Multi-row-block shape exercising the resident-param dynamic slice path.
    x3, w3, b3, rm3, rv3 = make_inputs(k3, 2, 64, 28, 28)
    out3 = jax.block_until_ready(frozen_batch_norm_2d(x3, w3, b3, rm3, rv3))
    ref3 = _reference(x3, w3, b3, rm3, rv3)
    assert jnp.allclose(out3, ref3, atol=1e-5, rtol=1e-5), "mismatch (multi-block)"

    print("KERNEL_OK")
</pallas_src>

<mosaic_0001>
module attributes {stable_mosaic.version = 11 : i64} {
  func.func @_frozen_bn_kernel(%arg0: i32, %arg1: i32, %arg2: memref<8x128xf32, #tpu.memory_space<vmem>>, %arg3: memref<8x1xf32, #tpu.memory_space<vmem>>, %arg4: memref<8x1xf32, #tpu.memory_space<vmem>>, %arg5: memref<8x128xf32, #tpu.memory_space<vmem>>) attributes {dimension_semantics = [#tpu.dimension_semantics<parallel>, #tpu.dimension_semantics<parallel>], iteration_bounds = array<i64: 1, 2>, scalar_prefetch = 0 : i64, scratch_operands = 0 : i64, tpu.core_type = #tpu.core_type<tc>, window_params = [{transform_indices = @transform_0, window_bounds = array<i64: 8, 128>}, {pipeline_mode = #tpu.pipeline_mode<synchronous>, transform_indices = @transform_1, window_bounds = array<i64: 8, 1>}, {pipeline_mode = #tpu.pipeline_mode<synchronous>, transform_indices = @transform_2, window_bounds = array<i64: 8, 1>}, {transform_indices = @transform_3, window_bounds = array<i64: 8, 128>}]} {
    %c0 = arith.constant 0 : index
    %c0_0 = arith.constant 0 : index
    %0 = vector.load %arg3[%c0, %c0_0] : memref<8x1xf32, #tpu.memory_space<vmem>>, vector<8x1xf32>
    %c0_1 = arith.constant 0 : index
    %c0_2 = arith.constant 0 : index
    %1 = vector.load %arg4[%c0_1, %c0_2] : memref<8x1xf32, #tpu.memory_space<vmem>>, vector<8x1xf32>
    %c0_3 = arith.constant 0 : index
    %c0_4 = arith.constant 0 : index
    %2 = vector.load %arg2[%c0_3, %c0_4] : memref<8x128xf32, #tpu.memory_space<vmem>>, vector<8x128xf32>
    %3 = vector.broadcast %0 : vector<8x1xf32> to vector<8x128xf32>
    %4 = arith.mulf %2, %3 : vector<8x128xf32>
    %5 = vector.broadcast %1 : vector<8x1xf32> to vector<8x128xf32>
    %6 = arith.addf %4, %5 : vector<8x128xf32>
    %c0_5 = arith.constant 0 : index
    %c0_6 = arith.constant 0 : index
    %7 = vector.load %arg5[%c0_5, %c0_6] : memref<8x128xf32, #tpu.memory_space<vmem>>, vector<8x128xf32>
    tpu.vector_store %arg5[%c0_5, %c0_6], %6 {strides = array<i32>} : memref<8x128xf32, #tpu.memory_space<vmem>>, vector<8x128xf32>,
    return
  }
  func.func @transform_0(%arg0: i32, %arg1: i32) -> (i32, i32) {
    %c0_i32 = arith.constant 0 : i32
    return %arg0, %arg1 : i32, i32
  }
  func.func @transform_1(%arg0: i32, %arg1: i32) -> (i32, i32) {
    %c0_i32 = arith.constant 0 : i32
    %c0_i32_0 = arith.constant 0 : i32
    %c0_i32_1 = arith.constant 0 : i32
    return %c0_i32, %c0_i32_0 : i32, i32
  }
  func.func @transform_2(%arg0: i32, %arg1: i32) -> (i32, i32) {
    %c0_i32 = arith.constant 0 : i32
    %c0_i32_0 = arith.constant 0 : i32
    %c0_i32_1 = arith.constant 0 : i32
    return %c0_i32, %c0_i32_0 : i32, i32
  }
  func.func @transform_3(%arg0: i32, %arg1: i32) -> (i32, i32) {
    %c0_i32 = arith.constant 0 : i32
    return %arg0, %arg1 : i32, i32
  }
}

</mosaic_0001>

<bundles_post_ra>
// kernel: tpu_custom_call.1
= control target key start
LH: loop header
LB: loop body
LE: loop exit
PB: predicated region body
PF: predicated region fallthrough
CT: control target
= control target key end

     0   :  { %8 = vsyncpa [#allocation3], 0  ;;  %s589_s0 = inlined_call_operand.vmem [shape: f32[8,256], index: 0, kind: input, shape index: {}]   ;;  %s590_s1 = inlined_call_operand.vmem [shape: f32[8,1], index: 1, kind: input, shape index: {}]   ;;  %s591_s2 = inlined_call_operand.vmem [shape: f32[8,1], index: 2, kind: input, shape index: {}]   ;;  %s592_s3 = inlined_call_operand.hbm [shape: f32[8,256], index: 3, kind: output, shape index: {}]  }
   0x1   :  { %10 = vsyncpa [#allocation3 + $0x1], 0  ;;  %s471_s12 = smov 0   ;;  %s473_s13 = smov 0  }
   0x2   :  { %s475_s14 = smov 0   ;;  %s477_s15 = smov 0  }
   0x3   :  { %s479_s16 = smov 0   ;;  %s481_s17 = smov 0  }
   0x4 LB: > { %s301_s18 = sadd.s32 4294967295, %s447_s17   ;;  %s302_s19 = sadd.s32 4294967294, %s447_s17   ;;  %s447_s17 = sphi %s481_s17, %s16_s17   ;;  %s443_s16 = sphi %s479_s16, %s599_s16   ;;  %s439_s15 = sphi %s477_s15, %s598_s15   ;;  %s435_s14 = sphi %s475_s14, %s597_s14   ;;  %s431_s13 = sphi %s473_s13, %s596_s13   ;;  %s427_s12 = sphi %s471_s12, %s595_s12  }
   0x5   : > { %s25_s20 = sadd.s32 1, %s443_s16  ;;  %s107_s21 = sadd.s32 1, %s435_s14 }
   0x6   : > { %p26_p0 = scmp.ge.s32.totalorder %s25_s20, 2  ;;  %p117_p1 = scmp.ne.s32.totalorder %s435_s14, %s431_s13 }
   0x7   : > { %p118_p2 = scmp.eq.s32.totalorder %s301_s18, 1  ;;  %p123_p3 = scmp.ne.s32.totalorder %s431_s13, %s427_s12 }
   0x8   : > { %s601_s20 = smov (%p26_p0, %s25_s20), 0  ;;  %p124_p5 = scmp.eq.s32.totalorder %s302_s19, 1 }
   0x9   : > { %p511_p4 = por %p118_p2, %p117_p1  ;;  %s103_s23 = ssub.s32 %s443_s16, %s601_s20 }
   0xa   : > { %p305_p6 = scmp.ge.s32.totalorder %s447_s17, 1  ;;  %p105_p7 = scmp.eq.s32.totalorder %s103_s23, 0 }
   0xb   : > { %p518_p8 = por %p124_p5, %p123_p3  ;;  %p159_p9 = scmp.lt.s32.totalorder %s447_s17, 3 }
   0xc   : > { %s524_s25 = scalar_select %p105_p7, %s435_s14, %s107_s21  }
   0xd   : > { %p160_p10 = pnand %p305_p6, %p159_p9 }
   0xe   : > { %v194_v0 = vld [vmem:[%s590_s1] sm:$0xff] (!%p160_p10)  ;;  %v449_v1 = vmov (!%p160_p10), 0   ;;  %p188_p11 = scmp.lt.s32.totalorder (!%p160_p10), %s439_s15, 1  ;;  %s183_s4 = sand.u32 (!%p160_p10), 1, %s431_s13  }
   0xf   : > { %163 = sbr.rel (%p160_p10) target bundleno = 164 (0xa4), region = 32  ;;  %368 = vset.pattern.permute.xlu0 (!%p160_p10), %v449_v1  ;;  %v195_v2 = vld [vmem:[%s591_s2] sm:$0xff] (!%p160_p10)  ;;  %s306_s6 = sshll.u32 (!%p160_p10), %s183_s4, 3 }
  0x10   : > { %199 = vperm.xlu0 (!%p160_p10), %368, %v194_v0   ;;  %s309_s10 = sshll.u32 (!%p160_p10), %s439_s15, 7  ;;  %s185_s11 = scalar_lea.vmem (!%p160_p10), [#allocation2], %s306_s6 }
  0x11   : > { %s226_s18 = sshll.u32 (!%p160_p10), %s185_s11, 4  ;;  %s542_s23 = scalar_lea.hbm (!%p160_p10), %s592_s3, %s309_s10  ;;  %s544_s18 = int_to_ptr.vmem [resolvable:$true] %s226_s18 }
  0x12   : > { %s211_s26 = scalar_lea.sflag (!%p160_p10), [#allocation3], %s183_s4  ;;  %s369_s27 = scalar_lea.vmem (!%p160_p10), %s544_s18, 128 }
  0x13   : > { %p370_p12 = scmp.ne.s32.totalorder (!%p160_p10), %s544_s18, %s369_s27 }
  0x14   : > { %205 = vperm.xlu0 (!%p160_p10), %368, %v195_v2  }
  0x15   : > { %p371_p13 = pnand (!%p160_p10), %p370_p12, %p511_p4 }
  0x16   : > { %s189_s30 = scalar_select %p188_p11, %s439_s15, 1 }
  0x17   : > { %p372_p0 = pneg %p371_p13  ;;  %s450_s15 = smov [#allocation2]  }
  0x18   : > { %s307_s5 = sshll.u32 %s189_s30, 3  ;;  %s373_s28 = sshll.u32 %s450_s15, 4  ;;  %s374_s28 = int_to_ptr.vmem [resolvable:$false] %s373_s28 }
  0x19   : > { %s193_s9 = scalar_lea.vmem %s589_s0, %s307_s5  ;;  %s375_s29 = scalar_lea.vmem %s374_s28, 256 }
  0x1a   : > { %v196_v4 = vld [vmem:[%s193_s9] sm:$0xff]  ;;  %p376_p1 = scmp.lt.s32.totalorder %s544_s18, %s374_s28  ;;  %p377_p2 = scmp.lt.s32.totalorder %s375_s29, %s369_s27 }
  0x1c   : > { %p378_p3 = por %p377_p2, %p376_p1 }
  0x1e   : > { %p379_p5 = pnand %p378_p3, %p372_p0 }
  0x8f   : > { %v200_v3 = vpop.permute.xlu0 %199 }
  0x90   : > { %v202_v5 = vmul.f32 %v200_v3, %v196_v4 }
  0x93   : > { %v206_v6 = vpop.permute.xlu0 %205 }
  0x94   : > { %v208_v7 = vadd.f32 %v206_v6, %v202_v5 }
  0x96   : > { %209 = vst [vmem:[%s185_s11] sm:$0xff] %v208_v7 }
  0x97   : > { %382 = shalt.err (!%p379_p5)
}
  0x98   : > { %s383_s30 = scalar_lea.hbm %s542_s23, 128  ;;  %s387_s6 = scalar_lea.hbm %s592_s3, 256 }
  0x99   : > { %p384_p6 = scmp.ne.s32.totalorder %s542_s23, %s383_s30  ;;  %p388_p10 = scmp.lt.u32.totalorder %s542_s23, %s592_s3 }
  0x9a   : > { %p389_p11 = scmp.lt.u32.totalorder %s387_s6, %s383_s30  ;;  %p391_p13 = scmp.lt.u32.totalorder %s383_s30, %s542_s23 }
  0x9b   : > { %p385_p7 = pnand %p384_p6, %p511_p4 }
  0x9c   : > { %p390_p12 = por %p389_p11, %p388_p10 }
  0x9d   : > { %p386_p9 = pneg %p385_p7 }
  0x9e   : > { %p392_p0 = por %p391_p13, %p390_p12 }
  0xa0   : > { %p393_p1 = pnand %p392_p0, %p386_p9 }
  0xa2   : > { %396 = shalt.err (!%p393_p1)
}
  0xa3   : > { %312 = dma.vmem_to_hbm [thread:$0]  (%p511_p4), %s544_s18, 128, %s542_s23, %s211_s26  }
  0xa4 PF: > { %p318_p2 = scmp.ge.s32.totalorder %s447_s17, 2  ;;  %s238_s9 = sand.u32 1, %s427_s12  }
  0xa5   : > { %s239_s10 = scalar_lea.sflag [#allocation3], %s238_s9 }
  0xa6   : > { %p315_p3 = pnand %p318_p2, %p518_p8 }
  0xa8   : > { %422 = dma.done.wait (!%p315_p3), %s239_s10, 128  }
  0xa9   : > { %424 = vsyncadd (!%p315_p3), %s239_s10, 4294967168  ;;  %s16_s17 = sadd.s32 1, %s447_s17   ;;  %s595_s12 = smov %s431_s13 }
  0xaa   : > { %p13_p5 = scmp.ge.s32.totalorder %s16_s17, 4   ;;  %s596_s13 = smov %s435_s14 }
  0xab   : > { %s597_s14 = smov %s524_s25  ;;  %s598_s15 = smov %s443_s16 }
  0xac   : > { %s599_s16 = smov %s601_s20  ;;  %15 = sbr.rel (!%p13_p5) target bundleno = 4 (0x4), region = 67 }
  0xb3   :  { %244 = vsyncpa [#allocation3], 1 }
  0xb4   :  { %246 = vsyncpa [#allocation3 + $0x1], 1 }

</bundles_post_ra>
